<compile_context>
chip_gen: v5e
topology: v5e:2x2
jax: 0.10.0
libtpu: 0.0.40
codegen_flags: <defaults>
</compile_context>

<pallas_src>
import jax
import jax.numpy as jnp
from jax.experimental import pallas as pl
from jax.experimental.pallas import tpu as pltpu


# --------------------------------------------------------------------------- #
# Kernel
# --------------------------------------------------------------------------- #
def _l2norm_kernel(eps):
    # sqrt is monotone: max(sqrt(s), eps) == sqrt(max(s, eps^2)), so we can
    # clamp the sum of squares and use a single rsqrt on the reduced tensor.
    eps_sq = float(eps) * float(eps)

    def kernel(x_ref, w_ref, o_ref):
        # x_ref: (TN, C, T_HW), w_ref: (1, C, 1), o_ref: (TN, C, T_HW)
        x = x_ref[...]
        xf = x.astype(jnp.float32)
        # Sum of squares over the channel (sublane) axis, accumulated in f32.
        sumsq = jnp.sum(xf * xf, axis=1, keepdims=True)          # (TN, 1, T_HW)
        inv = jax.lax.rsqrt(jnp.maximum(sumsq, eps_sq))          # EUP, (TN,1,T_HW)
        w = w_ref[...]                                           # (1, C, 1)
        if x.dtype == jnp.float32:
            o_ref[...] = (xf * inv) * w.astype(jnp.float32)
        else:
            # bf16 finish on the VPU (v6e/v7x have bf16 VALU); reduction
            # already happened in f32.
            o_ref[...] = (x * inv.astype(x.dtype)) * w.astype(x.dtype)

    return kernel


# --------------------------------------------------------------------------- #
# Tiling heuristics
# --------------------------------------------------------------------------- #
def _pick_hw_tile(hw, max_tile=2048):
    """Lane-axis tile.

    Preference order:
      1. hw % 128 == 0 -> largest 128-multiple divisor of hw <= max_tile
         (every store unmasked / lane-dense).
      2. hw <= max_tile -> full extent (full-extent blocks are exempt from
         the (8,128) rule and also store unmasked).
      3. otherwise -> max_tile with a cdiv grid; only the final edge block
         gets masked stores.
    """
    if hw % 128 == 0:
        best = 128
        t = 128
        while t <= min(hw, max_tile):
            if hw % t == 0:
                best = t
            t += 128
        return best
    if hw <= max_tile:
        return hw
    return max_tile


def _pick_batch_tile(n, per_sample_bytes, target_bytes=4 << 20):
    """Batch-axis tile: keep the block near target_bytes; prefer a divisor of
    n (no masked batch-edge block), otherwise fall back to the cap."""
    want = max(1, int(target_bytes // max(per_sample_bytes, 1)))
    want = min(want, n)
    best = 0
    for tn in range(1, want + 1):
        if n % tn == 0:
            best = tn
    return best if best > 0 else want


# --------------------------------------------------------------------------- #
# Wrapper
# --------------------------------------------------------------------------- #
def l2norm_layer(x, weight, eps=1e-10):
    """x: (N, C, H, W) NCHW; weight: (C,) per-channel scale."""
    N, C, H, W = x.shape
    HW = H * W
    itemsize = jnp.dtype(x.dtype).itemsize

    x_flat = x.reshape(N, C, HW)      # contiguous view, free
    w3d = weight.reshape(1, C, 1)

    # --- tiling -------------------------------------------------------------
    t_hw = _pick_hw_tile(HW)
    per_sample_bytes = C * t_hw * itemsize
    tn = _pick_batch_tile(N, per_sample_bytes)

    grid = (pl.cdiv(N, tn), pl.cdiv(HW, t_hw))
    block_bytes = tn * C * t_hw * itemsize

    # input + output, each double-buffered, plus the weight vector + slack.
    vmem_need = 4 * block_bytes + w3d.size * jnp.dtype(w3d.dtype).itemsize
    vmem_limit = min(max(vmem_need + (4 << 20), 16 << 20), 48 << 20)

    out_flat = pl.pallas_call(
        _l2norm_kernel(eps),
        out_shape=jax.ShapeDtypeStruct((N, C, HW), x.dtype),
        grid_spec=pltpu.PrefetchScalarGridSpec(
            num_scalar_prefetch=0,
            grid=grid,
            in_specs=[
                pl.BlockSpec((tn, C, t_hw), lambda i, j: (i, 0, j)),
                pl.BlockSpec((1, C, 1), lambda i, j: (0, 0, 0)),
            ],
            out_specs=pl.BlockSpec((tn, C, t_hw), lambda i, j: (i, 0, j)),
        ),
        compiler_params=pltpu.CompilerParams(
            dimension_semantics=("parallel", "parallel"),
            vmem_limit_bytes=int(vmem_limit),
        ),
    )(x_flat, w3d)

    return out_flat.reshape(N, C, H, W)


# --------------------------------------------------------------------------- #
# Pure-JAX reference (matches the PyTorch module)
# --------------------------------------------------------------------------- #
def l2norm_reference(x, weight, eps=1e-10):
    norm = jnp.sqrt(jnp.sum(x * x, axis=1, keepdims=True))
    denom = jnp.maximum(norm, eps)
    return (x / denom) * weight.reshape(1, -1, 1, 1)


if __name__ == "__main__":
    key = jax.random.PRNGKey(0)
    N, C, H, W = 2, 4, 16, 16
    scale = 20.0

    x = jax.random.normal(key, (N, C, H, W), dtype=jnp.float32)
    # deterministic parameter init, matching torch.full((n_channels,), scale)
    weight = jnp.full((C,), scale, dtype=jnp.float32)

    out = l2norm_layer(x, weight)
    out = jax.block_until_ready(out)

    ref = l2norm_reference(x, weight)
    assert out.shape == (N, C, H, W)
    assert jnp.allclose(out, ref, atol=1e-5, rtol=1e-5), "mismatch vs reference"

    print("KERNEL_OK")
</pallas_src>

<mosaic_0001>
module attributes {stable_mosaic.version = 11 : i64} {
  func.func @kernel(%arg0: i32, %arg1: i32, %arg2: memref<2x4x256xf32, #tpu.memory_space<vmem>>, %arg3: memref<1x4x1xf32, #tpu.memory_space<vmem>>, %arg4: memref<2x4x256xf32, #tpu.memory_space<vmem>>) attributes {dimension_semantics = [#tpu.dimension_semantics<parallel>, #tpu.dimension_semantics<parallel>], iteration_bounds = array<i64: 1, 1>, scalar_prefetch = 0 : i64, scratch_operands = 0 : i64, tpu.core_type = #tpu.core_type<tc>, window_params = [{transform_indices = @transform_0, window_bounds = array<i64: 2, 4, 256>}, {pipeline_mode = #tpu.pipeline_mode<synchronous>, transform_indices = @transform_1, window_bounds = array<i64: 1, 4, 1>}, {transform_indices = @transform_2, window_bounds = array<i64: 2, 4, 256>}]} {
    %c0 = arith.constant 0 : index
    %c0_0 = arith.constant 0 : index
    %c0_1 = arith.constant 0 : index
    %0 = vector.load %arg2[%c0, %c0_0, %c0_1] : memref<2x4x256xf32, #tpu.memory_space<vmem>>, vector<2x4x256xf32>
    %1 = arith.mulf %0, %0 : vector<2x4x256xf32>
    %cst = arith.constant dense<0.000000e+00> : vector<2x256xf32>
    %2 = vector.multi_reduction <add>, %1, %cst [1] : vector<2x4x256xf32> to vector<2x256xf32>
    %3 = vector.shape_cast %2 : vector<2x256xf32> to vector<2x1x256xf32>
    %cst_2 = arith.constant 9.99999968E-21 : f32
    %4 = vector.broadcast %cst_2 : f32 to vector<2x1x256xf32>
    %5 = arith.maximumf %3, %4 : vector<2x1x256xf32>
    %6 = math.rsqrt %5 : vector<2x1x256xf32>
    %c0_3 = arith.constant 0 : index
    %c0_4 = arith.constant 0 : index
    %c0_5 = arith.constant 0 : index
    %7 = vector.load %arg3[%c0_3, %c0_4, %c0_5] : memref<1x4x1xf32, #tpu.memory_space<vmem>>, vector<1x4x1xf32>
    %8 = vector.broadcast %6 : vector<2x1x256xf32> to vector<2x4x256xf32>
    %9 = arith.mulf %0, %8 : vector<2x4x256xf32>
    %10 = vector.broadcast %7 : vector<1x4x1xf32> to vector<2x4x256xf32>
    %11 = arith.mulf %9, %10 : vector<2x4x256xf32>
    %c0_6 = arith.constant 0 : index
    %c0_7 = arith.constant 0 : index
    %c0_8 = arith.constant 0 : index
    %12 = vector.load %arg4[%c0_6, %c0_7, %c0_8] : memref<2x4x256xf32, #tpu.memory_space<vmem>>, vector<2x4x256xf32>
    tpu.vector_store %arg4[%c0_6, %c0_7, %c0_8], %11 {strides = array<i32>} : memref<2x4x256xf32, #tpu.memory_space<vmem>>, vector<2x4x256xf32>,
    return
  }
  func.func @transform_0(%arg0: i32, %arg1: i32) -> (i32, i32, i32) {
    %c0_i32 = arith.constant 0 : i32
    %c0_i32_0 = arith.constant 0 : i32
    return %arg0, %c0_i32, %arg1 : i32, i32, i32
  }
  func.func @transform_1(%arg0: i32, %arg1: i32) -> (i32, i32, i32) {
    %c0_i32 = arith.constant 0 : i32
    %c0_i32_0 = arith.constant 0 : i32
    %c0_i32_1 = arith.constant 0 : i32
    %c0_i32_2 = arith.constant 0 : i32
    return %c0_i32, %c0_i32_0, %c0_i32_1 : i32, i32, i32
  }
  func.func @transform_2(%arg0: i32, %arg1: i32) -> (i32, i32, i32) {
    %c0_i32 = arith.constant 0 : i32
    %c0_i32_0 = arith.constant 0 : i32
    return %arg0, %c0_i32, %arg1 : i32, i32, i32
  }
}

</mosaic_0001>

<bundles_post_ra>
// kernel: tpu_custom_call.1
= control target key start
LH: loop header
LB: loop body
LE: loop exit
PB: predicated region body
PF: predicated region fallthrough
CT: control target
= control target key end

     0   :  { %7 = vsyncpa [#allocation3], 0  ;;  %s282_s0 = inlined_call_operand.hbm [shape: f32[2,4,256], index: 0, kind: input, shape index: {}]   ;;  %s283_s1 = inlined_call_operand.vmem [shape: f32[1,4,1], index: 1, kind: input, shape index: {}]   ;;  %s284_s2 = inlined_call_operand.hbm [shape: f32[2,4,256], index: 2, kind: output, shape index: {}]  }
   0x1   :  { %8 = vsyncpa [#allocation4], 0  ;;  %s13_s11 = sshll.u32 %s282_s0, 4  ;;  %s230_s12 = smov [#allocation2]   ;;  %s14_s11 = int_to_ptr.hbm [resolvable:$true] %s13_s11 }
   0x2   :  { %s15_s13 = sshll.u32 %s230_s12, 4  ;;  %s231_s14 = smov 128   ;;  %s16_s13 = int_to_ptr.vmem [resolvable:$true] %s15_s13 }
   0x3   :  { %s232_s15 = smov 8  }
   0x4   :  { %21 = dma.hbm_to_vmem [thread:$0]  %s14_s11, 256, %s16_s13, [#allocation3], %s231_s14, %s231_s14, %s232_s15  }
   0x5   :  { %226 = dma.done.wait [#allocation3], 256  }
   0x6   :  { %227 = vsyncadd [#allocation3], 4294967040  ;;  %v233_v0 = vmov 0   ;;  %v118_v1 = vld [vmem:[%s283_s1] sm:$0xf]  ;;  %v260_v2 = vld [vmem:[#allocation2] sm:$0xff] }
   0x7   :  { %169 = vset.pattern.permute.xlu0 %v233_v0  ;;  %v262_v3 = vld [vmem:[#allocation2 + $0x8] sm:$0xff]  ;;  %v30_v4 = vmul.f32 %v260_v2, %v260_v2  ;;  %vm45_vm0 = vcmask 1043456   ;;  %s235_s0 = smov [#allocation5]   ;;  %s150_s20 = sshll.u32 %s284_s2, 4  ;;  %s151_s20 = int_to_ptr.hbm [resolvable:$true] %s150_s20 }
   0x8   :  { %133 = vperm.xlu0 %169, %v118_v1   ;;  %v31_v5 = vmul.f32 %v262_v3, %v262_v3  ;;  %s148_s1 = sshll.u32 %s235_s0, 4  ;;  %s149_s1 = int_to_ptr.vmem [resolvable:$true] %s148_s1 }
   0x9   :  { %34 = vst [vmem:[#allocation1] ss:$2 sm:$0xff] %v30_v4 }
   0xa   :  { %38 = vst [vmem:[#allocation1 + $0x10] ss:$2 sm:$0xff] %v31_v5 }
  0x10   :  { %v36_v6 = vld.sshfl [vmem:[#allocation1 + $0x8] sm:$0xff pattern:$0x75316420]  ;;  %v35_v9 = vld.sshfl [vmem:[#allocation1] sm:$0xff pattern:$0x75316420] }
  0x11   :  { %v40_v7 = vld.sshfl [vmem:[#allocation1 + $0x18] sm:$0xff pattern:$0x75316420]  ;;  %v53_v8 = vsel %vm45_vm0, %v36_v6, 0.0  ;;  %v46_v11 = vsel %vm45_vm0, %v35_v9, 0.0 }
  0x12   :  { %v39_v10 = vld.sshfl [vmem:[#allocation1 + $0x10] sm:$0xff pattern:$0x75316420]  ;;  %v54_v12 = vrot.slane %v53_v8, 4  ;;  %v67_v14 = vsel %vm45_vm0, %v40_v7, 0.0  ;;  %v47_v15 = vrot.slane %v46_v11, 4 }
  0x13   :  { %v60_v13 = vsel %vm45_vm0, %v39_v10, 0.0  ;;  %v68_v17 = vrot.slane %v67_v14, 4 }
  0x14   :  { %v61_v16 = vrot.slane %v60_v13, 4  ;;  %v55_v18 = vadd.f32 %v54_v12, %v53_v8  ;;  %v48_v20 = vadd.f32 %v47_v15, %v46_v11  ;;  %v234_v8 = vmov 839922192  }
  0x15   :  { %v69_v19 = vadd.f32 %v68_v17, %v67_v14  ;;  %v136_v9 = vunpack.c.l.s4 %v234_v8 }
  0x16   :  { %v56_v21 = vrot.slane %v55_v18, 2  ;;  %v62_v22 = vadd.f32 %v61_v16, %v60_v13  ;;  %v49_v24 = vrot.slane %v48_v20, 2 }
  0x17   :  { %v70_v23 = vrot.slane %v69_v19, 2  ;;  %v137_v14 = vunpack.c.0.s8 %v136_v9 }
  0x18   :  { %v57_v25 = vadd.f32 %v56_v21, %v55_v18  ;;  %v63_v26 = vrot.slane %v62_v22, 2  ;;  %v50_v28 = vadd.f32 %v49_v24, %v48_v20 }
  0x19   :  { %v71_v27 = vadd.f32 %v70_v23, %v69_v19 }
  0x1a   :  { %v58_v29 = vrot.slane %v57_v25, 1  ;;  %v64_v30 = vadd.f32 %v63_v26, %v62_v22  ;;  %v51_v32 = vrot.slane %v50_v28, 1 }
  0x1b   :  { %v72_v31 = vrot.slane %v71_v27, 1 }
  0x1c   :  { %v59_v33 = vadd.f32 %v58_v29, %v57_v25  ;;  %v65_v34 = vrot.slane %v64_v30, 1  ;;  %v52_v36 = vadd.f32 %v51_v32, %v50_v28 }
  0x1d   :  { %v73_v35 = vadd.f32 %v72_v31, %v71_v27 }
  0x1e   :  { %v75_v37 = vmax.f32 %v59_v33, 1e-20  ;;  %v66_v38 = vadd.f32 %v65_v34, %v64_v30  ;;  %v74_v40 = vmax.f32 %v52_v36, 1e-20 }
  0x1f   :  { %v77_v39 = vmax.f32 %v73_v35, 1e-20 }
  0x20   :  { %170 = vrsqrt.f32 %v75_v37  ;;  %v76_v41 = vmax.f32 %v66_v38, 1e-20  ;;  %vm94_vm1 = vweird.f32 %v75_v37  ;;  %vm84_vm6 = vweird.f32 %v74_v40 }
  0x21   :  { %172 = vrsqrt.f32 %v77_v39  ;;  %vm114_vm3 = vweird.f32 %v77_v39 }
  0x22   :  { %174 = vrsqrt.f32 %v74_v40  ;;  %vm104_vm9 = vweird.f32 %v76_v41 }
  0x23   :  { %176 = vrsqrt.f32 %v76_v41 }
  0x26   :  { %v171_v42 = vpop.eup %170 }
  0x27   :  { %v173_v43 = vpop.eup %172  ;;  %v89_v45 = vmul.f32 %v171_v42, %v75_v37  ;;  %vm95_vm2 = vweird.f32 %v171_v42 }
  0x28   :  { %v175_v44 = vpop.eup %174  ;;  %v109_v46 = vmul.f32 %v173_v43, %v77_v39  ;;  %vm115_vm4 = vweird.f32 %v173_v43  ;;  %vm96_vm5 = vmor %vm94_vm1, %vm95_vm2 }
  0x29   :  { %v177_v47 = vpop.eup %176  ;;  %v79_v48 = vmul.f32 %v175_v44, %v74_v40  ;;  %v90_v49 = vmul.f32 %v171_v42, %v89_v45  ;;  %vm85_vm7 = vweird.f32 %v175_v44  ;;  %vm116_vm8 = vmor %vm114_vm3, %vm115_vm4 }
  0x2a   :  { %v99_v50 = vmul.f32 %v177_v47, %v76_v41  ;;  %v110_v51 = vmul.f32 %v173_v43, %v109_v46  ;;  %vm105_vm10 = vweird.f32 %v177_v47  ;;  %vm86_vm11 = vmor %vm84_vm6, %vm85_vm7 }
  0x2b   :  { %v80_v52 = vmul.f32 %v175_v44, %v79_v48  ;;  %v91_v53 = vmul.f32 0.5, %v90_v49  ;;  %vm106_vm12 = vmor %vm104_vm9, %vm105_vm10 }
  0x2c   :  { %v100_v54 = vmul.f32 %v177_v47, %v99_v50  ;;  %v111_v55 = vmul.f32 0.5, %v110_v51 }
  0x2d   :  { %v81_v56 = vmul.f32 0.5, %v80_v52  ;;  %v92_v57 = vsub.f32 1.5, %v91_v53 }
  0x2e   :  { %v101_v58 = vmul.f32 0.5, %v100_v54  ;;  %v112_v59 = vsub.f32 1.5, %v111_v55 }
  0x2f   :  { %v82_v60 = vsub.f32 1.5, %v81_v56  ;;  %v93_v61 = vmul.f32 %v171_v42, %v92_v57 }
  0x30   :  { %v102_v62 = vsub.f32 1.5, %v101_v58  ;;  %v113_v63 = vmul.f32 %v173_v43, %v112_v59 }
  0x31   :  { %v83_v0 = vmul.f32 %v175_v44, %v82_v60  ;;  %v97_v1 = vsel %vm96_vm5, %v171_v42, %v93_v61 }
  0x32   :  { %v103_v4 = vmul.f32 %v177_v47, %v102_v62  ;;  %v117_v5 = vsel %vm116_vm8, %v173_v43, %v113_v63  ;;  %v123_v6 = vrot.slane %v97_v1, 4 }
  0x33   :  { %v124_v7 = vrot.slane %v117_v5, 4  ;;  %v87_v10 = vsel %vm86_vm11, %v175_v44, %v83_v0 }
  0x34   :  { %v107_v11 = vsel %vm106_vm12, %v177_v47, %v103_v4  ;;  %v125_v12 = vsel %vm45_vm0, %v87_v10, %v123_v6 }
  0x35   :  { %v126_v13 = vsel %vm45_vm0, %v107_v11, %v124_v7  ;;  %v129_v15 = vmul.f32 %v125_v12, %v260_v2 }
  0x36   :  { %v130_v16 = vmul.f32 %v126_v13, %v262_v3 }
  0x7a   :  { %v134_v17 = vpop.permute.xlu0 %133 }
  0x7b   :  { %v138_v18 = vperm.slane %v134_v17, %v137_v14 }
  0x7d   :  { %v140_v19 = vmul.f32 %v138_v18, %v129_v15  ;;  %v141_v20 = vmul.f32 %v138_v18, %v130_v16 }
  0x7f   :  { %142 = vst [vmem:[#allocation5] sm:$0xff] %v140_v19 }
  0x80   :  { %143 = vst [vmem:[#allocation5 + $0x8] sm:$0xff] %v141_v20 }
  0x81   :  { %156 = dma.vmem_to_hbm [thread:$0]  %s149_s1, 256, %s151_s20, [#allocation4], %s231_s14, %s231_s14, %s232_s15  }
  0x82   :  { %228 = dma.done.wait [#allocation4], 256  }
  0x83   :  { %229 = vsyncadd [#allocation4], 4294967040 }
  0x84   :  { %161 = vsyncpa [#allocation3], 1 }
  0x85   :  { %162 = vsyncpa [#allocation4], 1 }

</bundles_post_ra>
